<compile_context>
chip_gen: v7x
topology: tpu7x:2x2x1
jax: 0.10.0
libtpu: 0.0.40
codegen_flags: <defaults>
</compile_context>

<pallas_src>
import jax
import jax.numpy as jnp
from jax.experimental import pallas as pl
from jax.experimental.pallas import tpu as pltpu


def _round_up(x, m):
    return ((x + m - 1) // m) * m


def regcn_embed_kernel(feat_ref, adj_ref, mask_ref,
                       w0_ref, w1_ref, wln_fused_ref, bias_fused_ref,
                       ge_ref):
    """One batch block: 2-layer ReGCN + mul-attention pooling -> padded graph embedding."""
    Bb, N, F = feat_ref.shape
    H = w0_ref.shape[1]
    WF = wln_fused_ref.shape[1]
    bf16 = jnp.bfloat16

    # Cast to bf16 AFTER DMA (inputs travel HBM->VMEM in their native dtype; avoids an
    # extra wrapper-side read+write pass over the dominant adjacency stream).
    feat = feat_ref[...].astype(bf16)            # (Bb, N, F)
    adj = adj_ref[...].astype(bf16)              # (Bb, N, N), resident for both layers
    mask = mask_ref[...].astype(jnp.float32)     # (Bb, N, 1)

    # --- GraphConvolution layer 0: relu(adj @ (x @ W0)) * mask ---
    s0 = jnp.dot(feat.reshape(Bb * N, F), w0_ref[...],
                 preferred_element_type=jnp.float32).reshape(Bb, N, H)
    h = jnp.maximum(
        jnp.einsum('bij,bjh->bih', adj, s0.astype(bf16),
                   preferred_element_type=jnp.float32), 0.0) * mask

    # --- GraphConvolution layer 1 (residual): h + relu(adj @ (h @ W1)) * mask ---
    s1 = jnp.dot(h.reshape(Bb * N, H).astype(bf16), w1_ref[...],
                 preferred_element_type=jnp.float32).reshape(Bb, N, H)
    h = h + jnp.maximum(
        jnp.einsum('bij,bjh->bih', adj, s1.astype(bf16),
                   preferred_element_type=jnp.float32), 0.0) * mask

    # --- fused ln + soft-attention matmul (lane-dense, 128-wide output):
    #     columns [0:H) = h @ Wln + bln, column H = h @ Watt + batt, rest zero. ---
    fused = (jnp.dot(h.reshape(Bb * N, H).astype(bf16), wln_fused_ref[...],
                     preferred_element_type=jnp.float32).reshape(Bb, N, WF)
             + bias_fused_ref[...])
    soft_att = jax.nn.sigmoid(fused[..., H:H + 1])      # (Bb, N, 1)
    y = jnp.maximum(fused, 0.0)                         # col H is garbage (killed by zero
                                                        # wd rows in the head), cols >H are 0
    z = (soft_att * mask) * y                           # mask applied on the (N,1) side
    ge_ref[...] = (jnp.sum(z, axis=1) * jnp.max(z, axis=1)).reshape(1, Bb, WF)


def classifier_head_kernel(ge_ref, wd_ref, bd_ref, wo_ref, bo_ref, out_ref):
    """PredictionClassification head for the whole (padded) batch in one shot."""
    bf16 = jnp.bfloat16
    d = jnp.tanh(jnp.dot(ge_ref[...].astype(bf16), wd_ref[...],
                         preferred_element_type=jnp.float32) + bd_ref[...])
    logits = jnp.dot(d.astype(bf16), wo_ref[...],
                     preferred_element_type=jnp.float32) + bo_ref[...]
    out_ref[...] = jax.nn.sigmoid(logits)


def gnn_regvd_forward(adj, adj_mask, adj_feature, params, block_b=8):
    """prob = sigmoid(classifier(ReGCN(feat, adj, mask)))  -- labels=None path."""
    B, N, F = adj_feature.shape
    # torch.squeeze(adj) is a no-op for (B,N,N); handle (B,1,N,N) and B==1 robustly.
    adj = adj.reshape((-1, adj.shape[-2], adj.shape[-1]))
    H = params["w0"].shape[1]
    C = params["wo"].shape[1]

    WF = _round_up(H + 1, 128)     # fused [wln | watt | 0-pad] output width
    HP = _round_up(H, 128)         # head hidden width
    CP = _round_up(C, 128)         # head output (lane-dense) width
    f32, bf16 = jnp.float32, jnp.bfloat16

    # --- batch block size: keep >=2 (prefer >=4) grid steps, bound VMEM footprint ---
    def _footprint(bb):
        dbl_inputs = 2 * bb * N * (N + F + 1) * 4       # double-buffered f32 input tiles
        bf16_copies = bb * N * (N + F) * 2              # in-kernel bf16 casts of adj/feat
        interm = bb * N * (2 * H + 2 * WF) * 4          # h, s, fused, z (f32)
        return dbl_inputs + bf16_copies + interm + 2 * bb * WF * 4

    vmem_budget = 40 * 1024 * 1024                      # headroom under v7x's 64 MiB
    min_steps = 4 if B >= 4 else (2 if B >= 2 else 1)
    Bb = max(1, min(block_b, B // min_steps))
    while Bb > 1 and _footprint(Bb) > vmem_budget:
        Bb -= 1
    G = -(-B // Bb)
    B_pad = G * Bb
    if B_pad != B:
        p = B_pad - B
        adj_feature = jnp.pad(adj_feature, ((0, p), (0, 0), (0, 0)))
        adj = jnp.pad(adj, ((0, p), (0, 0), (0, 0)))
        adj_mask = jnp.pad(adj_mask, ((0, p), (0, 0), (0, 0)))

    # --- small one-time weight prep ---
    wln_fused = jnp.zeros((H, WF), f32)
    wln_fused = wln_fused.at[:, :H].set(params["wln"]).at[:, H:H + 1].set(params["watt"])
    bias_fused = jnp.zeros((1, WF), f32)
    bias_fused = bias_fused.at[:, :H].set(params["bln"]).at[:, H:H + 1].set(params["batt"])
    wd_full = jnp.zeros((WF, HP), f32).at[:H, :H].set(params["wd"])   # zero rows kill col H
    bd_pad = jnp.zeros((1, HP), f32).at[:, :H].set(params["bd"])
    wo_full = jnp.zeros((HP, CP), f32).at[:H, :C].set(params["wo"])
    bo_pad = jnp.zeros((1, CP), f32).at[:, :C].set(params["bo"])

    full = lambda shape: pl.BlockSpec(shape, lambda g: tuple(0 for _ in shape))

    grid_spec = pltpu.PrefetchScalarGridSpec(
        num_scalar_prefetch=0,
        grid=(G,),
        in_specs=[
            pl.BlockSpec((Bb, N, F), lambda g: (g, 0, 0)),   # features (native dtype)
            pl.BlockSpec((Bb, N, N), lambda g: (g, 0, 0)),   # adjacency (native dtype)
            pl.BlockSpec((Bb, N, 1), lambda g: (g, 0, 0)),   # node mask
            full((F, H)),        # W0  (bf16)
            full((H, H)),        # W1  (bf16)
            full((H, WF)),       # fused [wln | watt | 0]   (bf16)
            full((1, WF)),       # fused bias [bln | batt | 0] (f32)
        ],
        out_specs=pl.BlockSpec((1, Bb, WF), lambda g: (g, 0, 0)),
    )
    vmem_limit = int(min(max(2 * _footprint(Bb), 32 * 1024 * 1024), 64 * 1024 * 1024))

    ge_pad = pl.pallas_call(
        regcn_embed_kernel,
        out_shape=jax.ShapeDtypeStruct((G, Bb, WF), f32),
        grid_spec=grid_spec,
        compiler_params=pltpu.CompilerParams(
            dimension_semantics=("parallel",),
            vmem_limit_bytes=vmem_limit),
    )(adj_feature, adj, adj_mask,
      params["w0"].astype(bf16), params["w1"].astype(bf16),
      wln_fused.astype(bf16), bias_fused).reshape(B_pad, WF)

    # --- classification head: one tiny pallas_call over the whole padded batch ---
    probs = pl.pallas_call(
        classifier_head_kernel,
        out_shape=jax.ShapeDtypeStruct((B_pad, CP), f32),
        grid_spec=pltpu.PrefetchScalarGridSpec(
            num_scalar_prefetch=0,
            grid=(1,),
            in_specs=[full((B_pad, WF)), full((WF, HP)), full((1, HP)),
                      full((HP, CP)), full((1, CP))],
            out_specs=full((B_pad, CP)),
        ),
    )(ge_pad, wd_full.astype(bf16), bd_pad, wo_full.astype(bf16), bo_pad)

    return probs[:B, :C]


def gnn_regvd_reference(adj, adj_mask, adj_feature, params):
    """Pure-JAX f32 reference of the same forward pass."""
    adj = adj.reshape((-1, adj.shape[-2], adj.shape[-1])).astype(jnp.float32)
    x = adj_feature.astype(jnp.float32)
    mask = adj_mask.astype(jnp.float32)
    h = jnp.maximum(jnp.einsum('bij,bjh->bih', adj, x @ params["w0"]), 0.0) * mask
    h = h + jnp.maximum(jnp.einsum('bij,bjh->bih', adj, h @ params["w1"]), 0.0) * mask
    soft_att = jax.nn.sigmoid(h @ params["watt"] + params["batt"])
    y = jnp.maximum(h @ params["wln"] + params["bln"], 0.0)
    z = soft_att * y * mask
    graph_emb = jnp.sum(z, axis=1) * jnp.max(z, axis=1)
    d = jnp.tanh(graph_emb @ params["wd"] + params["bd"])
    logits = d @ params["wo"] + params["bo"]
    return jax.nn.sigmoid(logits)


def make_params(key, F, H, C):
    ks = jax.random.split(key, 10)
    scale = 0.1
    return {
        "w0":   scale * jax.random.normal(ks[0], (F, H), jnp.float32),
        "w1":   scale * jax.random.normal(ks[1], (H, H), jnp.float32),
        "watt": scale * jax.random.normal(ks[2], (H, 1), jnp.float32),
        "batt": scale * jax.random.normal(ks[3], (1, 1), jnp.float32),
        "wln":  scale * jax.random.normal(ks[4], (H, H), jnp.float32),
        "bln":  scale * jax.random.normal(ks[5], (1, H), jnp.float32),
        "wd":   scale * jax.random.normal(ks[6], (H, H), jnp.float32),
        "bd":   scale * jax.random.normal(ks[7], (1, H), jnp.float32),
        "wo":   scale * jax.random.normal(ks[8], (H, C), jnp.float32),
        "bo":   scale * jax.random.normal(ks[9], (1, C), jnp.float32),
    }


if __name__ == "__main__":
    B, N, F, H, C = 4, 16, 32, 32, 2   # batch, nodes, feature_dim_size, hidden_size, classes
    key = jax.random.PRNGKey(0)
    k_feat, k_adj, k_mask, k_par = jax.random.split(key, 4)

    adj_feature = jax.random.normal(k_feat, (B, N, F), jnp.float32)
    # symmetric-ish row-normalized adjacency
    a = jax.random.uniform(k_adj, (B, N, N), jnp.float32)
    a = (a + jnp.transpose(a, (0, 2, 1))) * 0.5 + jnp.eye(N)[None]
    adj = a / jnp.sum(a, axis=-1, keepdims=True)
    # mask: trailing nodes inactive in some graphs
    mask = jnp.ones((B, N, 1), jnp.float32)
    mask = mask.at[1, 12:, 0].set(0.0)
    mask = mask.at[3, 10:, 0].set(0.0)

    params = make_params(k_par, F, H, C)

    prob = gnn_regvd_forward(adj, mask, adj_feature, params)
    prob = jax.block_until_ready(prob)

    ref = gnn_regvd_reference(adj, mask, adj_feature, params)
    assert prob.shape == (B, C)
    assert bool(jnp.all(jnp.isfinite(prob)))
    max_err = float(jnp.max(jnp.abs(prob - ref)))
    assert max_err < 5e-2, f"mismatch vs f32 reference: {max_err}"
    print("KERNEL_OK")
</pallas_src>

<mosaic_0001>
module attributes {stable_mosaic.version = 11 : i64} {
  func.func @regcn_embed_kernel(%arg0: i32, %arg1: memref<1x16x32xf32, #tpu.memory_space<vmem>>, %arg2: memref<1x16x16xf32, #tpu.memory_space<vmem>>, %arg3: memref<1x16x1xf32, #tpu.memory_space<vmem>>, %arg4: memref<32x32xbf16, #tpu.memory_space<vmem>>, %arg5: memref<32x32xbf16, #tpu.memory_space<vmem>>, %arg6: memref<32x128xbf16, #tpu.memory_space<vmem>>, %arg7: memref<1x128xf32, #tpu.memory_space<vmem>>, %arg8: memref<1x1x128xf32, #tpu.memory_space<vmem>>) attributes {dimension_semantics = [#tpu.dimension_semantics<parallel>], iteration_bounds = array<i64: 4>, scalar_prefetch = 0 : i64, scratch_operands = 0 : i64, tpu.core_type = #tpu.core_type<tc>, window_params = [{transform_indices = @transform_0, window_bounds = array<i64: 1, 16, 32>}, {transform_indices = @transform_1, window_bounds = array<i64: 1, 16, 16>}, {transform_indices = @transform_2, window_bounds = array<i64: 1, 16, 1>}, {pipeline_mode = #tpu.pipeline_mode<synchronous>, transform_indices = @transform_3, window_bounds = array<i64: 32, 32>}, {pipeline_mode = #tpu.pipeline_mode<synchronous>, transform_indices = @transform_4, window_bounds = array<i64: 32, 32>}, {pipeline_mode = #tpu.pipeline_mode<synchronous>, transform_indices = @transform_5, window_bounds = array<i64: 32, 128>}, {pipeline_mode = #tpu.pipeline_mode<synchronous>, transform_indices = @transform_6, window_bounds = array<i64: 1, 128>}, {transform_indices = @transform_7, window_bounds = array<i64: 1, 1, 128>}]} {
    %c0 = arith.constant 0 : index
    %c0_0 = arith.constant 0 : index
    %c0_1 = arith.constant 0 : index
    %0 = vector.load %arg1[%c0, %c0_0, %c0_1] : memref<1x16x32xf32, #tpu.memory_space<vmem>>, vector<1x16x32xf32>
    %1 = arith.truncf %0 : vector<1x16x32xf32> to vector<1x16x32xbf16>
    %c0_2 = arith.constant 0 : index
    %c0_3 = arith.constant 0 : index
    %c0_4 = arith.constant 0 : index
    %2 = vector.load %arg2[%c0_2, %c0_3, %c0_4] : memref<1x16x16xf32, #tpu.memory_space<vmem>>, vector<1x16x16xf32>
    %3 = arith.truncf %2 : vector<1x16x16xf32> to vector<1x16x16xbf16>
    %c0_5 = arith.constant 0 : index
    %c0_6 = arith.constant 0 : index
    %c0_7 = arith.constant 0 : index
    %4 = vector.load %arg3[%c0_5, %c0_6, %c0_7] : memref<1x16x1xf32, #tpu.memory_space<vmem>>, vector<1x16x1xf32>
    %5 = vector.shape_cast %1 : vector<1x16x32xbf16> to vector<16x32xbf16>
    %c0_8 = arith.constant 0 : index
    %c0_9 = arith.constant 0 : index
    %6 = vector.load %arg4[%c0_8, %c0_9] : memref<32x32xbf16, #tpu.memory_space<vmem>>, vector<32x32xbf16>
    %cst = arith.constant dense<0.000000e+00> : vector<16x32xf32>
    %7 = tpu.matmul %5, %6, %cst {dimension_numbers = #tpu.dot_dimension_numbers<[1], [0], [0], [1], [0, 0, 1, 1], [], []>} : vector<16x32xbf16>, vector<32x32xbf16>, vector<16x32xf32> -> vector<16x32xf32>
    %8 = vector.shape_cast %7 : vector<16x32xf32> to vector<1x16x32xf32>
    %9 = arith.truncf %8 : vector<1x16x32xf32> to vector<1x16x32xbf16>
    "tpu.trace_start"() <{level = 10 : i32, message = "bij,bjh->bih"}> : () -> ()
    %cst_10 = arith.constant dense<0.000000e+00> : vector<1x16x32xf32>
    %10 = tpu.matmul %3, %9, %cst_10 {dimension_numbers = #tpu.dot_dimension_numbers<[2], [1], [1], [2], [0, 0, 0, 1, 1, 2], [0], [0]>} : vector<1x16x16xbf16>, vector<1x16x32xbf16>, vector<1x16x32xf32> -> vector<1x16x32xf32>
    "tpu.trace_stop"() : () -> ()
    %cst_11 = arith.constant 0.000000e+00 : f32
    %11 = vector.broadcast %cst_11 : f32 to vector<1x16x32xf32>
    %12 = arith.maximumf %10, %11 : vector<1x16x32xf32>
    %13 = vector.broadcast %4 : vector<1x16x1xf32> to vector<1x16x32xf32>
    %14 = arith.mulf %12, %13 : vector<1x16x32xf32>
    %15 = vector.shape_cast %14 : vector<1x16x32xf32> to vector<16x32xf32>
    %16 = arith.truncf %15 : vector<16x32xf32> to vector<16x32xbf16>
    %c0_12 = arith.constant 0 : index
    %c0_13 = arith.constant 0 : index
    %17 = vector.load %arg5[%c0_12, %c0_13] : memref<32x32xbf16, #tpu.memory_space<vmem>>, vector<32x32xbf16>
    %cst_14 = arith.constant dense<0.000000e+00> : vector<16x32xf32>
    %18 = tpu.matmul %16, %17, %cst_14 {dimension_numbers = #tpu.dot_dimension_numbers<[1], [0], [0], [1], [0, 0, 1, 1], [], []>} : vector<16x32xbf16>, vector<32x32xbf16>, vector<16x32xf32> -> vector<16x32xf32>
    %19 = vector.shape_cast %18 : vector<16x32xf32> to vector<1x16x32xf32>
    %20 = arith.truncf %19 : vector<1x16x32xf32> to vector<1x16x32xbf16>
    "tpu.trace_start"() <{level = 10 : i32, message = "bij,bjh->bih"}> : () -> ()
    %cst_15 = arith.constant dense<0.000000e+00> : vector<1x16x32xf32>
    %21 = tpu.matmul %3, %20, %cst_15 {dimension_numbers = #tpu.dot_dimension_numbers<[2], [1], [1], [2], [0, 0, 0, 1, 1, 2], [0], [0]>} : vector<1x16x16xbf16>, vector<1x16x32xbf16>, vector<1x16x32xf32> -> vector<1x16x32xf32>
    "tpu.trace_stop"() : () -> ()
    %cst_16 = arith.constant 0.000000e+00 : f32
    %22 = vector.broadcast %cst_16 : f32 to vector<1x16x32xf32>
    %23 = arith.maximumf %21, %22 : vector<1x16x32xf32>
    %24 = vector.broadcast %4 : vector<1x16x1xf32> to vector<1x16x32xf32>
    %25 = arith.mulf %23, %24 : vector<1x16x32xf32>
    %26 = arith.addf %14, %25 : vector<1x16x32xf32>
    %27 = vector.shape_cast %26 : vector<1x16x32xf32> to vector<16x32xf32>
    %28 = arith.truncf %27 : vector<16x32xf32> to vector<16x32xbf16>
    %c0_17 = arith.constant 0 : index
    %c0_18 = arith.constant 0 : index
    %29 = vector.load %arg6[%c0_17, %c0_18] : memref<32x128xbf16, #tpu.memory_space<vmem>>, vector<32x128xbf16>
    %cst_19 = arith.constant dense<0.000000e+00> : vector<16x128xf32>
    %30 = tpu.matmul %28, %29, %cst_19 {dimension_numbers = #tpu.dot_dimension_numbers<[1], [0], [0], [1], [0, 0, 1, 1], [], []>} : vector<16x32xbf16>, vector<32x128xbf16>, vector<16x128xf32> -> vector<16x128xf32>
    %31 = vector.shape_cast %30 : vector<16x128xf32> to vector<1x16x128xf32>
    %c0_20 = arith.constant 0 : index
    %c0_21 = arith.constant 0 : index
    %32 = vector.load %arg7[%c0_20, %c0_21] : memref<1x128xf32, #tpu.memory_space<vmem>>, vector<1x128xf32>
    %33 = vector.shape_cast %32 : vector<1x128xf32> to vector<1x1x128xf32>
    %34 = vector.broadcast %33 : vector<1x1x128xf32> to vector<1x16x128xf32>
    %35 = arith.addf %31, %34 : vector<1x16x128xf32>
    %36 = vector.extract_strided_slice %35 {offsets = [0, 0, 32], sizes = [1, 16, 1], strides = [1, 1, 1]} : vector<1x16x128xf32> to vector<1x16x1xf32>
    %37 = arith.negf %36 : vector<1x16x1xf32>
    %38 = math.exp %37 : vector<1x16x1xf32>
    %cst_22 = arith.constant 1.000000e+00 : f32
    %39 = vector.broadcast %cst_22 : f32 to vector<1x16x1xf32>
    %40 = arith.addf %39, %38 : vector<1x16x1xf32>
    %41 = arith.divf %39, %40 : vector<1x16x1xf32>
    %cst_23 = arith.constant 0.000000e+00 : f32
    %42 = vector.broadcast %cst_23 : f32 to vector<1x16x128xf32>
    %43 = arith.maximumf %35, %42 : vector<1x16x128xf32>
    %44 = arith.mulf %41, %4 : vector<1x16x1xf32>
    %45 = vector.broadcast %44 : vector<1x16x1xf32> to vector<1x16x128xf32>
    %46 = arith.mulf %45, %43 : vector<1x16x128xf32>
    %cst_24 = arith.constant dense<0.000000e+00> : vector<1x128xf32>
    %47 = vector.multi_reduction <add>, %46, %cst_24 [1] : vector<1x16x128xf32> to vector<1x128xf32>
    %cst_25 = arith.constant dense<0xFF800000> : vector<1x128xf32>
    %48 = vector.multi_reduction <maximumf>, %46, %cst_25 [1] : vector<1x16x128xf32> to vector<1x128xf32>
    %49 = arith.mulf %47, %48 : vector<1x128xf32>
    %50 = vector.shape_cast %49 : vector<1x128xf32> to vector<1x1x128xf32>
    %c0_26 = arith.constant 0 : index
    %c0_27 = arith.constant 0 : index
    %c0_28 = arith.constant 0 : index
    %51 = vector.load %arg8[%c0_26, %c0_27, %c0_28] : memref<1x1x128xf32, #tpu.memory_space<vmem>>, vector<1x1x128xf32>
    tpu.vector_store %arg8[%c0_26, %c0_27, %c0_28], %50 {strides = array<i32>} : memref<1x1x128xf32, #tpu.memory_space<vmem>>, vector<1x1x128xf32>,
    return
  }
  func.func @transform_0(%arg0: i32) -> (i32, i32, i32) {
    %c0_i32 = arith.constant 0 : i32
    %c0_i32_0 = arith.constant 0 : i32
    %c0_i32_1 = arith.constant 0 : i32
    return %arg0, %c0_i32, %c0_i32_0 : i32, i32, i32
  }
  func.func @transform_1(%arg0: i32) -> (i32, i32, i32) {
    %c0_i32 = arith.constant 0 : i32
    %c0_i32_0 = arith.constant 0 : i32
    %c0_i32_1 = arith.constant 0 : i32
    return %arg0, %c0_i32, %c0_i32_0 : i32, i32, i32
  }
  func.func @transform_2(%arg0: i32) -> (i32, i32, i32) {
    %c0_i32 = arith.constant 0 : i32
    %c0_i32_0 = arith.constant 0 : i32
    %c0_i32_1 = arith.constant 0 : i32
    return %arg0, %c0_i32, %c0_i32_0 : i32, i32, i32
  }
  func.func @transform_3(%arg0: i32) -> (i32, i32) {
    %c0_i32 = arith.constant 0 : i32
    %c0_i32_0 = arith.constant 0 : i32
    %c0_i32_1 = arith.constant 0 : i32
    return %c0_i32, %c0_i32_0 : i32, i32
  }
  func.func @transform_4(%arg0: i32) -> (i32, i32) {
    %c0_i32 = arith.constant 0 : i32
    %c0_i32_0 = arith.constant 0 : i32
    %c0_i32_1 = arith.constant 0 : i32
    return %c0_i32, %c0_i32_0 : i32, i32
  }
  func.func @transform_5(%arg0: i32) -> (i32, i32) {
    %c0_i32 = arith.constant 0 : i32
    %c0_i32_0 = arith.constant 0 : i32
    %c0_i32_1 = arith.constant 0 : i32
    return %c0_i32, %c0_i32_0 : i32, i32
  }
  func.func @transform_6(%arg0: i32) -> (i32, i32) {
    %c0_i32 = arith.constant 0 : i32
    %c0_i32_0 = arith.constant 0 : i32
    %c0_i32_1 = arith.constant 0 : i32
    return %c0_i32, %c0_i32_0 : i32, i32
  }
  func.func @transform_7(%arg0: i32) -> (i32, i32, i32) {
    %c0_i32 = arith.constant 0 : i32
    %c0_i32_0 = arith.constant 0 : i32
    %c0_i32_1 = arith.constant 0 : i32
    return %arg0, %c0_i32, %c0_i32_0 : i32, i32, i32
  }
}

</mosaic_0001>

<bundles_post_ra>
// kernel: tpu_custom_call.1
= control target key start
LH: loop header
LB: loop body
LE: loop exit
PB: predicated region body
PF: predicated region fallthrough
CT: control target
= control target key end

     0   :  { %12 = vsyncpa [#allocation3], 0  ;;  %s1503_s0 = inlined_call_operand.vmem [shape: f32[4,16,32], index: 0, kind: input, shape index: {}]   ;;  %s1504_s1 = inlined_call_operand.hbm [shape: f32[4,16,16], index: 1, kind: input, shape index: {}]   ;;  %s1505_s2 = inlined_call_operand.vmem [shape: f32[4,16,1], index: 2, kind: input, shape index: {}]   ;;  %s1506_s3 = inlined_call_operand.hbm [shape: bf16[32,32], index: 3, kind: input, shape index: {}]   ;;  %s1507_s4 = inlined_call_operand.vmem [shape: bf16[32,32], index: 4, kind: input, shape index: {}]   ;;  %s1508_s5 = inlined_call_operand.hbm [shape: bf16[32,128], index: 5, kind: input, shape index: {}]   ;;  %s1509_s6 = inlined_call_operand.vmem [shape: f32[1,128], index: 6, kind: input, shape index: {}]   ;;  %s1510_s7 = inlined_call_operand.hbm [shape: f32[4,1,128], index: 7, kind: output, shape index: {}]  }
   0x1   :  { %14 = vsyncpa [#allocation3 + $0x1], 0 }
   0x2   :  { %15 = vsyncpa [#allocation6], 0 }
   0x3   :  { %16 = vsyncpa [#allocation4], 0 }
   0x4   :  { %18 = vsyncpa [#allocation4 + $0x1], 0  ;;  %s1235_s24 = smov 0   ;;  %s1237_s25 = smov 0  }
   0x5   :  { %s1239_s26 = smov 0   ;;  %s1241_s27 = smov 0  }
   0x6 LB: > { %s1256_s28 = sadd.s32 4294967295, %s1180_s27   ;;  %s846_s29 = sadd.s32 4294967294, %s1180_s27   ;;  %s1180_s27 = sphi %s1241_s27, %s1529_s27   ;;  %s1176_s26 = sphi %s1239_s26, %s1528_s26   ;;  %s1172_s25 = sphi %s1237_s25, %s1527_s25   ;;  %s1168_s24 = sphi %s1235_s24, %s1526_s24  }
   0x7   : > { %p70_p0 = scmp.ne.s32.totalorder %s1172_s25, %s1168_s24  ;;  %p1511_p1 = scmp.eq.s32.totalorder %s1256_s28, 0 }
   0x8   : > { %p210_p3 = scmp.eq.s32.totalorder %s846_s29, 3  ;;  %p847_p5 = scmp.ge.s32.totalorder %s1180_s27, 1 }
   0x9   : > { %p1265_p4 = por %p1511_p1, %p70_p0  ;;  %p217_p7 = scmp.lt.s32.totalorder %s1180_s27, 5 }
   0xa   : > { %p1270_p6 = por %p210_p3, %p70_p0  ;;  %s1182_s10 = smov [#allocation5]  }
   0xb   : > { %s1514_s30 = scalar_select %p1265_p4, 1, 0 }
   0xc   : > { %s1515_s8 = scalar_select %p1270_p6, 1, 0 }
   0xd   : > { %p1275_p8 = pnand %p847_p5, %p217_p7  ;;  %s229_s11 = sshll.u32 %s1182_s10, 4  ;;  %s230_s11 = int_to_ptr.vmem [resolvable:$true] %s229_s11 }
   0xe   : > { %s1183_s13 = smov [#allocation7]   ;;  %s1024_s17 = scalar_lea.hbm %s1506_s3, 256 }
   0xf   : > { %s1516_s9 = scalar_select %p1275_p8, 1, 0 }
  0x10   : > { %p943_p9 = pneg %p1275_p8  ;;  %s245_s14 = sshll.u32 %s1183_s13, 4  ;;  %s1287_s14 = int_to_ptr.vmem [resolvable:$true] %s245_s14 }
  0x11   : > { %p1025_p11 = scmp.ne.s32.totalorder %s1506_s3, %s1024_s17  ;;  %p1031_p3 = scmp.lt.u32.totalorder %s1024_s17, %s1506_s3 }
  0x12   : > { %p1283_p10 = pnand %p943_p9, %p1511_p1 }
  0x14   : > { %p1026_p12 = pneg %p1283_p10 }
  0x16   : > { %p1027_p13 = pnand %p1026_p12, %p1025_p11 }
  0x18   : > { %p1028_p0 = pneg %p1027_p13 }
  0x1a   : > { %p1033_p5 = pnand %p1031_p3, %p1028_p0 }
  0x1c   : > { %1036 = shalt.err (!%p1033_p5)
}
  0x1d   : > { %s1037_s22 = scalar_lea.vmem %s230_s11, 256  ;;  %p1045_p2 = scmp.lt.s32.totalorder %s230_s11, %s230_s11 }
  0x1e   : > { %p1038_p7 = scmp.ne.s32.totalorder %s230_s11, %s1037_s22  ;;  %p1046_p6 = scmp.lt.s32.totalorder %s1037_s22, %s1037_s22 }
  0x20   : > { %p1040_p9 = pnand %p1038_p7, %p1026_p12  ;;  %p1047_p4 = por %p1046_p6, %p1045_p2 }
  0x22   : > { %p1041_p1 = pneg %p1040_p9 }
  0x24   : > { %p1048_p8 = pnand %p1047_p4, %p1041_p1 }
  0x26   : > { %1051 = shalt.err (!%p1048_p8)
}
  0x27   : > { %s1184_s23 = smov 64   ;;  %s1185_s29 = smov 4  }
  0x28   : > { %946 = dma.hbm_to_vmem [thread:$0]  (!%p1283_p10), %s1506_s3, 256, %s230_s11, [#allocation6], %s1184_s23, %s1184_s23, %s1185_s29  }
  0x29   : > { %s1052_s17 = scalar_lea.hbm %s1508_s5, 256 }
  0x2a   : > { %p1053_p11 = scmp.ne.s32.totalorder %s1508_s5, %s1052_s17  ;;  %p1059_p4 = scmp.lt.u32.totalorder %s1052_s17, %s1508_s5 }
  0x2c   : > { %p1055_p1 = pnand %p1053_p11, %p1026_p12 }
  0x2e   : > { %p1056_p2 = pneg %p1055_p1 }
  0x30   : > { %p1061_p6 = pnand %p1059_p4, %p1056_p2 }
  0x32   : > { %1064 = shalt.err (!%p1061_p6)
}
  0x33   : > { %s1065_s11 = scalar_lea.vmem %s1287_s14, 256  ;;  %p1073_p3 = scmp.lt.s32.totalorder %s1287_s14, %s1287_s14 }
  0x34   : > { %p1066_p8 = scmp.ne.s32.totalorder %s1287_s14, %s1065_s11  ;;  %p1074_p5 = scmp.lt.s32.totalorder %s1065_s11, %s1065_s11 }
  0x36   : > { %p1068_p13 = pnand %p1066_p8, %p1026_p12  ;;  %p1075_p7 = por %p1074_p5, %p1073_p3 }
  0x38   : > { %p1069_p0 = pneg %p1068_p13 }
  0x3a   : > { %p1076_p9 = pnand %p1075_p7, %p1069_p0 }
  0x3c   : > { %1079 = shalt.err (!%p1076_p9)
}
  0x3d   : > { %949 = dma.hbm_to_vmem [thread:$0]  (!%p1283_p10), %s1508_s5, 256, %s1287_s14, [#allocation6], %s1184_s23, %s1184_s23, %s1185_s29  }
  0x3e   : > { %s1337_s13 = sadd.s32 1, %s1180_s27   ;;  %s57_s12 = sadd.s32 1, %s1176_s26 }
  0x3f   : > { %s54_s15 = ssub.s32 %s1180_s27, %s1337_s13  ;;  %p64_p12 = scmp.ne.s32.totalorder %s1176_s26, %s1172_s25 }
  0x40   : > { %p55_p11 = scmp.eq.s32.totalorder %s54_s15, 0  ;;  %p65_p1 = scmp.eq.s32.totalorder %s1180_s27, 0 }
  0x41   : > { %p1518_p2 = scmp.eq.s32.totalorder %s1256_s28, 3  ;;  %p960_p6 = scmp.lt.s32.totalorder %s1180_s27, 4 }
  0x42   : > { %s1353_s17 = scalar_select %p55_p11, %s1176_s26, %s57_s12  }
  0x43   : > { %p1347_p4 = por %p1518_p2, %p64_p12  ;;  %p66_p8 = por %p65_p1, %p64_p12 }
  0x44   : > { %s270_s18 = sand.u32 1, %s1176_s26   ;;  %s879_s14 = sshll.u32 %s1180_s27, 8 }
  0x45   : > { %s851_s19 = sshll.u32 %s270_s18, 4  ;;  %s1360_s20 = scalar_lea.hbm %s1504_s1, %s879_s14 }
  0x46   : > { %s274_s21 = scalar_lea.vmem [#allocation2], %s851_s19  ;;  %p1364_p10 = pnand %p960_p6, %p66_p8 }
  0x47   : > { %s281_s11 = sshll.u32 %s274_s21, 4  ;;  %s1368_s10 = scalar_lea.sflag [#allocation3], %s270_s18  ;;  %s1362_s11 = int_to_ptr.vmem [resolvable:$true] %s281_s11 }
  0x48   : > { %s1080_s12 = scalar_lea.hbm %s1360_s20, 256  ;;  %p1082_p0 = pneg %p1364_p10 }
  0x49   : > { %p1081_p13 = scmp.ne.s32.totalorder %s1360_s20, %s1080_s12  ;;  %s1085_s14 = scalar_lea.hbm %s1504_s1, 1024 }
  0x4a   : > { %p1086_p7 = scmp.lt.u32.totalorder %s1360_s20, %s1504_s1  ;;  %p1087_p9 = scmp.lt.u32.totalorder %s1085_s14, %s1080_s12 }
  0x4b   : > { %p1083_p3 = pnand %p1082_p0, %p1081_p13  ;;  %p1089_p11 = scmp.lt.u32.totalorder %s1080_s12, %s1360_s20 }
  0x4c   : > { %p1088_p12 = por %p1087_p9, %p1086_p7 }
  0x4d   : > { %p1084_p5 = pneg %p1083_p3 }
  0x4e   : > { %p1090_p1 = por %p1089_p11, %p1088_p12 }
  0x50   : > { %p1091_p2 = pnand %p1090_p1, %p1084_p5 }
  0x52   : > { %1094 = shalt.err (!%p1091_p2)
}
  0x53   : > { %s1095_s18 = scalar_lea.vmem %s1362_s11, 256  ;;  %s1186_s21 = smov [#allocation2]  }
  0x54   : > { %p1096_p6 = scmp.ne.s32.totalorder %s1362_s11, %s1095_s18  ;;  %s1100_s15 = sshll.u32 %s1186_s21, 4  ;;  %s1101_s15 = int_to_ptr.vmem [resolvable:$false] %s1100_s15 }
  0x55   : > { %s1102_s19 = scalar_lea.vmem %s1101_s15, 512  ;;  %p1103_p3 = scmp.lt.s32.totalorder %s1362_s11, %s1101_s15 }
  0x56   : > { %p1098_p8 = pnand %p1096_p6, %p1082_p0  ;;  %p1104_p7 = scmp.lt.s32.totalorder %s1102_s19, %s1095_s18 }
  0x58   : > { %p1099_p13 = pneg %p1098_p8  ;;  %p1105_p9 = por %p1104_p7, %p1103_p3 }
  0x5a   : > { %p1106_p12 = pnand %p1105_p9, %p1099_p13 }
  0x5c   : > { %1109 = shalt.err (!%p1106_p12)
}
  0x5d   : > { %s1187_s12 = smov 128   ;;  %s1188_s14 = smov 8  }
  0x5e   : > { %953 = dma.hbm_to_vmem [thread:$0]  (!%p1364_p10), %s1360_s20, 256, %s1362_s11, %s1368_s10, %s1187_s12, %s1187_s12, %s1188_s14  }
  0x5f   : > { %p1521_p0 = scmp.ne.s32.totalorder %s1516_s9, 0 }
  0x60   : > { %s1399_s23 = sand.u32 (!%p1521_p0), 1, %s1172_s25   ;;  %p1522_p5 = scmp.ne.s32.totalorder (!%p1521_p0), %s1514_s30, 0 }
  0x61   : > { %301 = sbr.rel (%p1521_p0) target bundleno = 1402 (0x57a), region = 48  ;;  %s855_s29 = sshll.u32 (!%p1521_p0), %s1399_s23, 4 }
  0x62   : > { %s304_s18 = scalar_lea.sflag (!%p1521_p0), [#allocation3], %s1399_s23  ;;  %s1403_s21 = scalar_lea.vmem (!%p1521_p0), [#allocation2], %s855_s29 }
  0x68   : > { %1155 = dma.done.wait (%p1522_p5), %s304_s18, 256  }
  0x69   : > { %1157 = vsyncadd (%p1522_p5), %s304_s18, 4294967040  ;;  %p1523_p10 = scmp.eq.s32.totalorder %s1256_s28, 0 }
  0x6b   : > { %1159 = dma.done.wait (%p1523_p10), [#allocation6], 512   ;;  %p1524_p11 = pmov %p1523_p10 }
  0x6c   : > { %p355_p1 = scmp.lt.s32.totalorder %s1256_s28, 3  ;;  %v1189_v0 = vmov 0.0   ;;  %vm1190_vm0 = vmmov 0   ;;  %v1010_v1 = vld [vmem:[#allocation5] sm:$0xff]   ;;  %v1011_v2 = vld [vmem:[#allocation5 + $0x8] sm:$0xff]   ;;  %vm390_vm1 = vcmask 261120  }
  0x6d   : > { %1161 = vsyncadd (%p1524_p11), [#allocation6], 4294966784  ;;  %895 = vmatprep.subr.bf16.mxu0 %v1189_v0  ;;  %899 = vmatprep.mubr.msk.bf16.mxu0 %vm1190_vm0, %v1189_v0  ;;  %v1191_v6 = vmov 0   ;;  %v369_v11 = vld [vmem:[%s1403_s21] sm:$0xff]  ;;  %v370_v12 = vld [vmem:[%s1403_s21 + $0x8] sm:$0xff]  ;;  %vm436_vm2 = vcmask 130048  }
  0x6e   : > { %s356_s9 = scalar_select %p355_p1, %s1256_s28, 3  ;;  %903 = vmatprep.subr.bf16.mxu1 %v1189_v0  ;;  %905 = vmatprep.mubr.msk.bf16.mxu1 %vm1190_vm0, %v1189_v0  ;;  %v371_v16 = vpack.c.bf16 %v370_v12, %v369_v11  ;;  %v1012_v17 = vld [vmem:[%s1507_s4] sm:$0xff]   ;;  %v1013_v18 = vld [vmem:[%s1507_s4 + $0x8] sm:$0xff]   ;;  %v1014_v35 = vld [vmem:[#allocation7] sm:$0xff]   ;;  %v1193_v48 = vmov 32  }
  0x6f   : > { %896 = vmatpush3.bf16.msra.mxu0 %v1010_v1  ;;  %1007 = vset.pattern.permute.xlu0 %v1191_v6  ;;  %v1015_v36 = vld [vmem:[#allocation7 + $0x8] sm:$0xff]   ;;  %s1192_s21 = smov 32   ;;  %v873_v49 = vld [vmem:[%s1509_s6] ss:$0 sm:$0xff]  ;;  %s876_s20 = sshll.u32 %s1256_s28, 4 }
  0x70   : > { %s880_s30 = sshll.u32 %s356_s9, 4  ;;  %897 = vmatprep.subr.bf16.mxu0 %v1189_v0  ;;  %1009 = vset.pattern.permute.xlu1 %v1193_v48  ;;  %s354_s11 = scalar_lea.vmem [#allocation8], %s1399_s23 }
  0x71   : > { %s359_s22 = scalar_lea.vmem %s1503_s0, %s880_s30  ;;  %s364_s19 = scalar_lea.vmem %s1505_s2, %s880_s30 }
  0x72   : > { %v366_v3 = vld [vmem:[%s359_s22] sm:$0xff]  ;;  %v367_v4 = vld [vmem:[%s359_s22 + $0x8] sm:$0xff]  ;;  %s737_s22 = sshll.u32 %s354_s11, 4  ;;  %s725_s12 = scalar_lea.sflag [#allocation4], %s1399_s23  ;;  %s1462_s22 = int_to_ptr.vmem [resolvable:$true] %s737_s22 }
  0x73   : > { %v368_v5 = vpack.c.bf16 %v367_v4, %v366_v3  ;;  %898 = vmatpush3.bf16.msra.mxu0 %v1011_v2  ;;  %v372_v7 = vld [vmem:[%s364_s19] sm:$0xff]  ;;  %v373_v8 = vld [vmem:[%s364_s19 + $0x8] sm:$0xff]  ;;  %s1460_s19 = scalar_lea.hbm %s1510_s7, %s876_s20  ;;  %s1110_s14 = scalar_lea.vmem %s1462_s22, 16 }
  0x74   : > { %917 = vmatprep.subr.bf16.mxu0 %v1189_v0  ;;  %485 = vperm.xlu0 %1007, %v372_v7   ;;  %p1111_p2 = scmp.ne.s32.totalorder %s1462_s22, %s1110_s14  ;;  %s1194_s28 = smov [#allocation8]  }
  0x75   : > { %688 = vrot.lane.b32.xlu1 %v372_v7, %s1192_s21  ;;  %s1114_s29 = sshll.u32 %s1194_s28, 4  ;;  %s1115_s29 = int_to_ptr.vmem [resolvable:$false] %s1114_s29 }
  0x76   : > { %900 = vmatmul.mubr.msk.bf16.vlgmr.msra.gmra.mrb[0].mxu0 %vm390_vm1, %v368_v5  ;;  %p1112_p6 = pnand %p1111_p2, %p1347_p4  ;;  %s1116_s18 = scalar_lea.vmem %s1115_s29, 32 }
  0x77   : > { %919 = vmatprep.mubr.msk.bf16.mxu0 %vm1190_vm0, %v1189_v0  ;;  %p1117_p13 = scmp.lt.s32.totalorder %s1462_s22, %s1115_s29  ;;  %p1118_p3 = scmp.lt.s32.totalorder %s1116_s18, %s1110_s14 }
  0x78   : > { %490 = vperm.xlu0 %1007, %v373_v8   ;;  %p1113_p8 = pneg %p1112_p6 }
  0x79   : > { %690 = vrot.lane.b32.xlu1 %v373_v8, %s1192_s21  ;;  %p1119_p7 = por %p1118_p3, %p1117_p13 }
  0x7b   : > { %p1120_p9 = pnand %p1119_p7, %p1113_p8 }
  0x7c   : > { %1008 = vset.pattern.permute.xlu0 %v1193_v48 }
  0xe7   : > { %v689_v62 = vpop.permute.xlu1 %688 }
  0xf3   : > { %v486_v19 = vpop.permute.xlu0 %485 }
  0xf7   : > { %v491_v26 = vpop.permute.xlu0 %490 }
 0x149   : > { %v428_v9 = vpop.f32.mrb[0].mxu0 }
 0x14a   : > { %v901_v10 = vpop.f32.mrb[1].mxu0 }
 0x14b   : > { %v431_v13 = vpop.f32.mrb[2].mxu0 }
 0x14c   : > { %v435_v14 = vpack.c.bf16 %v431_v13, %v428_v9  ;;  %v902_v15 = vpop.f32.mrb[3].mxu0 }
 0x14e   : > { %904 = vmatpush3.bf16.msra.mxu1 %v435_v14 }
 0x14f   : > { %909 = vmatprep.subr.bf16.mxu1 %v1189_v0 }
 0x151   : > { %906 = vmatmul.mubr.msk.bf16.vlgmr.msra.gmra.mrb[0].mxu1 %vm436_vm2, %v371_v16 }
 0x152   : > { %913 = vmatprep.mubr.msk.bf16.mxu1 %vm1190_vm0, %v1189_v0  ;;  %910 = vmatpush3.bf16.msra.mxu1 %v1012_v17 }
 0x153   : > { %911 = vmatprep.subr.bf16.mxu1 %v1189_v0 }
 0x156   : > { %912 = vmatpush3.bf16.msra.mxu1 %v1013_v18 }
 0x157   : > { %923 = vmatprep.subr.bf16.mxu1 %v1189_v0 }
 0x224   : > { %v474_v20 = vpop.f32.mrb[0].mxu1 }
 0x225   : > { %v481_v21 = vmax.f32 %v474_v20, 0.0  ;;  %v907_v22 = vpop.f32.mrb[1].mxu1 }
 0x226   : > { %v477_v23 = vpop.f32.mrb[2].mxu1 }
 0x227   : > { %v482_v24 = vmax.f32 %v477_v23, 0.0  ;;  %v908_v25 = vpop.f32.mrb[3].mxu1  ;;  %v493_v27 = vmul.f32 %v486_v19, %v481_v21 }
 0x229   : > { %v494_v28 = vmul.f32 %v491_v26, %v482_v24 }
 0x22b   : > { %v495_v29 = vpack.c.bf16 %v494_v28, %v493_v27 }
 0x22d   : > { %914 = vmatmul.mubr.msk.bf16.vlgmr.msra.gmra.mrb[4].mxu1 %vm390_vm1, %v495_v29 }
 0x22e   : > { %927 = vmatprep.mubr.msk.bf16.mxu1 %vm1190_vm0, %v1189_v0  ;;  %924 = vmatpush3.bf16.msra.mxu1 %v1014_v35 }
 0x22f   : > { %925 = vmatprep.subr.bf16.mxu1 %v1189_v0  ;;  %v691_v0 = vpop.permute.xlu1 %690 }
 0x232   : > { %926 = vmatpush3.bf16.msra.mxu1 %v1015_v36 }
 0x300   : > { %v549_v30 = vpop.f32.mrb[4].mxu1 }
 0x301   : > { %v915_v31 = vpop.f32.mrb[5].mxu1 }
 0x302   : > { %v552_v32 = vpop.f32.mrb[6].mxu1 }
 0x303   : > { %v556_v33 = vpack.c.bf16 %v552_v32, %v549_v30  ;;  %v916_v34 = vpop.f32.mrb[7].mxu1 }
 0x305   : > { %918 = vmatpush3.bf16.msra.mxu0 %v556_v33 }
 0x308   : > { %920 = vmatmul.mubr.msk.bf16.vlgmr.msra.gmra.mrb[4].mxu0 %vm436_vm2, %v371_v16 }
 0x3db   : > { %v591_v37 = vpop.f32.mrb[4].mxu0 }
 0x3dc   : > { %v598_v38 = vmax.f32 %v591_v37, 0.0  ;;  %v921_v39 = vpop.f32.mrb[5].mxu0 }
 0x3dd   : > { %v594_v40 = vpop.f32.mrb[6].mxu0 }
 0x3de   : > { %v600_v41 = vmul.f32 %v598_v38, %v486_v19  ;;  %v599_v42 = vmax.f32 %v594_v40, 0.0  ;;  %v922_v43 = vpop.f32.mrb[7].mxu0 }
 0x3e0   : > { %v601_v44 = vmul.f32 %v599_v42, %v491_v26  ;;  %v602_v45 = vadd.f32 %v600_v41, %v493_v27 }
 0x3e2   : > { %v603_v46 = vadd.f32 %v601_v44, %v494_v28 }
 0x3e4   : > { %v604_v47 = vpack.c.bf16 %v603_v46, %v602_v45 }
 0x3e6   : > { %928 = vmatmul.mubr.msk.bf16.vlgmr.msra.gmra.mrb[8].mxu1 %vm390_vm1, %v604_v47 }
 0x4b9   : > { %v658_v50 = vpop.f32.mrb[8].mxu1 }
 0x4ba   : > { %v672_v51 = vadd.f32 %v873_v49, %v658_v50  ;;  %v929_v52 = vpop.f32.mrb[9].mxu1 }
 0x4bb   : > { %v661_v53 = vpop.f32.mrb[10].mxu1 }
 0x4bc   : > { %v874_v54 = vmul.f32 -1.442695, %v672_v51  ;;  %v673_v55 = vadd.f32 %v873_v49, %v661_v53  ;;  %v930_v56 = vpop.f32.mrb[11].mxu1  ;;  %v686_v5 = vmax.f32 %v672_v51, 0.0 }
 0x4be   : > { %1016 = vpow2.f32 %v874_v54  ;;  %v875_v57 = vmul.f32 -1.442695, %v673_v55  ;;  %v687_v6 = vmax.f32 %v673_v55, 0.0 }
 0x4c0   : > { %1018 = vpow2.f32 %v875_v57 }
 0x4c8   : > { %v1017_v58 = vpop.eup %1016 }
 0x4c9   : > { %v680_v59 = vadd.f32 1.0, %v1017_v58 }
 0x4ca   : > { %v1019_v60 = vpop.eup %1018 }
 0x4cb   : > { %1020 = vrcp.f32 %v680_v59  ;;  %v681_v61 = vadd.f32 1.0, %v1019_v60 }
 0x4cd   : > { %1022 = vrcp.f32 %v681_v61 }
 0x4d5   : > { %v1021_v63 = vpop.eup %1020 }
 0x4d6   : > { %v694_v1 = vmul.f32 %v1021_v63, %v689_v62 }
 0x4d7   : > { %v1023_v2 = vpop.eup %1022 }
 0x4d8   : > { %v695_v3 = vmul.f32 %v1023_v2, %v691_v0  ;;  %698 = vperm.xlu0 %1008, %v694_v1  }
 0x4da   : > { %703 = vperm.xlu1 %1009, %v695_v3  }
 0x557   : > { %v699_v4 = vpop.permute.xlu0 %698 }
 0x558   : > { %v706_v8 = vmul.f32 %v699_v4, %v686_v5 }
 0x559   : > { %v704_v7 = vpop.permute.xlu1 %703 }
 0x55a   : > { %v707_v9 = vmul.f32 %v704_v7, %v687_v6 }
 0x55c   : > { %v708_v10 = vadd.f32 %v707_v9, %v706_v8  ;;  %v715_v11 = vmax.f32 %v706_v8, %v707_v9 }
 0x55e   : > { %v709_v12 = vrot.slane %v708_v10, 4  ;;  %v716_v13 = vrot.slane %v715_v11, 4 }
 0x560   : > { %v710_v14 = vadd.f32 %v709_v12, %v708_v10  ;;  %v717_v15 = vmax.f32 %v715_v11, %v716_v13 }
 0x562   : > { %v711_v16 = vrot.slane %v710_v14, 2  ;;  %v718_v17 = vrot.slane %v717_v15, 2 }
 0x564   : > { %v712_v18 = vadd.f32 %v711_v16, %v710_v14  ;;  %v719_v19 = vmax.f32 %v717_v15, %v718_v17 }
 0x566   : > { %v713_v20 = vrot.slane %v712_v18, 1  ;;  %v720_v21 = vrot.slane %v719_v19, 1 }
 0x568   : > { %v714_v22 = vadd.f32 %v713_v20, %v712_v18  ;;  %v721_v23 = vmax.f32 %v719_v19, %v720_v21 }
 0x56a   : > { %v722_v24 = vmul.f32 %v721_v23, %v714_v22 }
 0x56c   : > { %723 = vst [vmem:[%s354_s11] sm:$0x1] %v722_v24 }
 0x56d   : > { %1123 = shalt.err (!%p1120_p9)
}
 0x56e   : > { %s1124_s23 = scalar_lea.hbm %s1460_s19, 16  ;;  %s1128_s30 = scalar_lea.hbm %s1510_s7, 64 }
 0x56f   : > { %p1125_p12 = scmp.ne.s32.totalorder %s1460_s19, %s1124_s23  ;;  %p1129_p10 = scmp.lt.u32.totalorder %s1460_s19, %s1510_s7 }
 0x570   : > { %p1130_p11 = scmp.lt.u32.totalorder %s1128_s30, %s1124_s23  ;;  %p1132_p2 = scmp.lt.u32.totalorder %s1124_s23, %s1460_s19 }
 0x571   : > { %p1126_p0 = pnand %p1125_p12, %p1347_p4 }
 0x572   : > { %p1131_p1 = por %p1130_p11, %p1129_p10 }
 0x573   : > { %p1127_p5 = pneg %p1126_p0 }
 0x574   : > { %p1133_p6 = por %p1132_p2, %p1131_p1 }
 0x576   : > { %p1134_p8 = pnand %p1133_p6, %p1127_p5 }
 0x578   : > { %1137 = shalt.err (!%p1134_p8)
}
 0x579   : > { %941 = dma.vmem_to_hbm [thread:$0]  (%p1347_p4), %s1462_s22, 16, %s1460_s19, %s725_s12  }
 0x57a PF: > { %p963_p13 = scmp.ge.s32.totalorder %s1180_s27, 2  ;;  %s749_s10 = sand.u32 1, %s1168_s24  }
 0x57b   : > { %p1525_p3 = scmp.ne.s32.totalorder %s1515_s8, 0  ;;  %s750_s15 = scalar_lea.sflag [#allocation4], %s749_s10 }
 0x57d   : > { %p955_p7 = pnand %p963_p13, %p1525_p3 }
 0x57f   : > { %1163 = dma.done.wait (!%p955_p7), %s750_s15, 16  }
 0x580   : > { %1165 = vsyncadd (!%p955_p7), %s750_s15, 4294967280  ;;  %p21_p9 = scmp.ge.s32.totalorder %s1337_s13, 6   ;;  %s1526_s24 = smov %s1172_s25 }
 0x581   : > { %s1527_s25 = smov %s1176_s26  ;;  %s1528_s26 = smov %s1353_s17 }
 0x582   : > { %s1529_s27 = smov %s1337_s13  ;;  %23 = sbr.rel (!%p21_p9) target bundleno = 6 (0x6), region = 107 }
 0x589   :  { %754 = vsyncpa [#allocation3], 1 }
 0x58a   :  { %756 = vsyncpa [#allocation3 + $0x1], 1 }
 0x58b   :  { %757 = vsyncpa [#allocation6], 1 }
 0x58c   :  { %758 = vsyncpa [#allocation4], 1 }
 0x58d   :  { %760 = vsyncpa [#allocation4 + $0x1], 1 }

</bundles_post_ra>
